<compile_context>
chip_gen: v7x
topology: tpu7x:2x2x1
jax: 0.10.0
libtpu: 0.0.40
codegen_flags: <defaults>
</compile_context>

<pallas_src>
import functools
import math

import jax
import jax.numpy as jnp
import numpy as np
from jax.experimental import pallas as pl
from jax.experimental.pallas import tpu as pltpu

BN_EPS = 1e-5


# --------------------- pltpu.roll convention probe ---------------------

_ROLL_LIKE_NP = None


def _roll_matches_np_roll():
    """True iff pltpu.roll(x, s, ax) == np.roll(x, s, ax) (resolved once on device)."""
    global _ROLL_LIKE_NP
    if _ROLL_LIKE_NP is None:
        lane = jnp.arange(128, dtype=jnp.float32)[None, :]
        x = jnp.tile(lane, (8, 1))

        def k(x_ref, o_ref):
            o_ref[...] = pltpu.roll(x_ref[...], 1, 1)

        y = pl.pallas_call(
            k, out_shape=jax.ShapeDtypeStruct((8, 128), jnp.float32))(x)
        val = float(np.asarray(y)[0, 0])
        # np.roll convention -> y[0,0] == 127 ; opposite -> y[0,0] == 1
        _ROLL_LIKE_NP = bool(abs(val - 1.0) > 0.5)
    return _ROLL_LIKE_NP


# ----------------------------- Pallas kernel -----------------------------

def _ida_step_kernel(xp_ref, prev_ref, wp_ref, pb_ref, up_ref, wn_ref, nb_ref,
                     mask_ref, o_ref, *, shifts):
    # xp_ref  : (1, 9*Ci, Si)  pre-built im2col patch of layers[i]
    # prev_ref: (1, o, So)     previous (skip) layer, flattened spatial
    # wp_ref  : (o, 9*Ci)      proj weights, BN scale folded in
    # up_ref  : (Si, So)       kron(Uh, Uw)^T  == depthwise bilinear ConvTranspose2d
    # wn_ref  : (o, 9*o)       node weights, BN scale folded in
    # mask_ref: (9, 1, So)     per-tap boundary masks for the node conv
    # o_ref   : (1, o, So)     lane-dense output slab

    # ---- proj: 3x3 conv (+folded BN) + ReLU as a single im2col matmul ----
    p = jnp.dot(wp_ref[...], xp_ref[0], preferred_element_type=jnp.float32)
    p = jnp.maximum(p + pb_ref[...], 0.0)                       # (o, Si)

    # ---- depthwise bilinear ConvTranspose2d == one matmul (separable taps) ----
    z = jnp.dot(p, up_ref[...], preferred_element_type=jnp.float32)   # (o, So)
    z = z + prev_ref[0]                                          # skip connection

    # ---- node: 3x3 conv; im2col patch built in-VMEM via lane rolls + masks ----
    slabs = []
    for t, sh in enumerate(shifts):
        zs = z if sh == 0 else pltpu.roll(z, sh, 1)
        slabs.append(zs * mask_ref[t])                           # (o, So)
    patch = jnp.concatenate(slabs, axis=0)                       # (9*o, So)
    y = jnp.dot(wn_ref[...], patch, preferred_element_type=jnp.float32)
    o_ref[0] = jnp.maximum(y + nb_ref[...], 0.0).astype(o_ref.dtype)


# ----------------------------- wrapper -----------------------------

def _im2col_nchw(x):
    # x: (N, C, H, W) -> (N, 9*C, H*W); row = tap*C + c, taps over (dy,dx) row-major.
    N, C, H, W = x.shape
    xp = jnp.pad(x, ((0, 0), (0, 0), (1, 1), (1, 1)))
    slabs = [xp[:, :, 1 + dy:1 + dy + H, 1 + dx:1 + dx + W]
             for dy in (-1, 0, 1) for dx in (-1, 0, 1)]
    return jnp.concatenate(slabs, axis=1).reshape(N, 9 * C, H * W)


@functools.partial(jax.jit, static_argnames=("o", "Ho", "Wo", "shifts"))
def _ida_step(x, prev, wp, pb, upm, wn, nb, nmask, *, o, Ho, Wo, shifts):
    N, Ci, Hi, Wi = x.shape
    Si, So = Hi * Wi, Ho * Wo
    xpatch = _im2col_nchw(x)                       # tiny XLA glue (few 100 KiB)
    prevf = prev.reshape(N, o, So)
    out = pl.pallas_call(
        functools.partial(_ida_step_kernel, shifts=shifts),
        out_shape=jax.ShapeDtypeStruct((N, o, So), x.dtype),
        grid=(N,),
        in_specs=[
            pl.BlockSpec((1, 9 * Ci, Si), lambda n: (n, 0, 0)),
            pl.BlockSpec((1, o, So), lambda n: (n, 0, 0)),
            pl.BlockSpec((o, 9 * Ci), lambda n: (0, 0)),
            pl.BlockSpec((o, 1), lambda n: (0, 0)),
            pl.BlockSpec((Si, So), lambda n: (0, 0)),
            pl.BlockSpec((o, 9 * o), lambda n: (0, 0)),
            pl.BlockSpec((o, 1), lambda n: (0, 0)),
            pl.BlockSpec((9, 1, So), lambda n: (0, 0, 0)),
        ],
        out_specs=pl.BlockSpec((1, o, So), lambda n: (n, 0, 0)),
        compiler_params=pltpu.CompilerParams(
            dimension_semantics=("parallel",)),      # megacore sharding on v7x
    )(xpatch, prevf, wp, pb, upm, wn, nb, nmask)
    return out.reshape(N, o, Ho, Wo)


# ----------------------------- parameters / geometry -----------------------------

def _bilinear_up_matrix(f, Hi, Wi):
    """ConvTranspose2d(C, C, 2f, stride=f, padding=f//2, groups=C) with
    fill_up_weights taps as a single (Hi*Wi, Ho*Wo) matmul operand kron(Uh,Uw)^T."""
    K = 2 * f
    fc = int(math.ceil(K / 2))
    cc = (2 * fc - 1 - fc % 2) / (2.0 * fc)
    u = np.array([1.0 - abs(a / fc - cc) for a in range(K)], dtype=np.float64)
    pd = f // 2

    def up_1d(n_in):
        n_out = (n_in - 1) * f - 2 * pd + K
        U = np.zeros((n_out, n_in), np.float64)
        for p in range(n_out):
            for i in range(n_in):
                a = p + pd - f * i
                if 0 <= a < K:
                    U[p, i] = u[a]
        return U

    Uh, Uw = up_1d(Hi), up_1d(Wi)
    Ho, Wo = Uh.shape[0], Uw.shape[0]
    return jnp.asarray(np.kron(Uh, Uw).T.astype(np.float32)), Ho, Wo


def _node_conv_masks(Ho, Wo):
    yy, xx = np.meshgrid(np.arange(Ho), np.arange(Wo), indexing="ij")
    m = []
    for dy in (-1, 0, 1):
        for dx in (-1, 0, 1):
            ok = ((yy + dy >= 0) & (yy + dy < Ho)
                  & (xx + dx >= 0) & (xx + dx < Wo))
            m.append(ok.reshape(-1).astype(np.float32))
    return jnp.asarray(np.stack(m, 0).reshape(9, 1, Ho * Wo))


def _node_shift_amounts(Ho, Wo):
    So = Ho * Wo
    sgn = -1 if _roll_matches_np_roll() else 1
    return tuple((sgn * (dy * Wo + dx)) % So
                 for dy in (-1, 0, 1) for dx in (-1, 0, 1))


def _deform_conv_params(key, cin, cout):
    # TODO(synk): DCN offset/mask prediction branch not translated; plain 3x3 conv.
    ks = jax.random.split(key, 6)
    w = jax.random.normal(ks[0], (3, 3, cin, cout), jnp.float32) / math.sqrt(9.0 * cin)
    conv_b = 0.02 * jax.random.normal(ks[1], (cout,), jnp.float32)
    gamma = 1.0 + 0.05 * jax.random.normal(ks[2], (cout,), jnp.float32)
    beta = 0.05 * jax.random.normal(ks[3], (cout,), jnp.float32)
    mean = 0.05 * jax.random.normal(ks[4], (cout,), jnp.float32)
    var = 1.0 + 0.1 * jax.random.uniform(ks[5], (cout,), jnp.float32)
    scale = gamma / jnp.sqrt(var + BN_EPS)          # eval-mode BN folded
    bias = beta + (conv_b - mean) * scale
    # lane-dense kernel layout: (cout, 9*cin), columns ordered tap*cin + cin,
    # BN scale folded directly into the weights.
    wmat = jnp.transpose(w, (3, 0, 1, 2)).reshape(cout, 9 * cin) * scale[:, None]
    return dict(w=w, scale=scale, bias=bias,
                wmat=wmat, bvec=bias.reshape(cout, 1))


class IDAUpPallas:
    def __init__(self, o, channels, up_f, key):
        self.o = o
        self.up_f = [int(f) for f in up_f]
        self.params = {}
        for i in range(1, len(channels)):
            c = channels[i]
            key, k_proj, k_node = jax.random.split(key, 3)
            self.params['proj_%d' % i] = _deform_conv_params(k_proj, c, o)
            self.params['node_%d' % i] = _deform_conv_params(k_node, o, o)
        self._geom_cache = {}
        _roll_matches_np_roll()   # resolve roll convention once, eagerly

    def _geometry(self, f, Hi, Wi):
        k = (f, Hi, Wi)
        if k not in self._geom_cache:
            upm, Ho, Wo = _bilinear_up_matrix(f, Hi, Wi)
            self._geom_cache[k] = (upm, _node_conv_masks(Ho, Wo),
                                   _node_shift_amounts(Ho, Wo), Ho, Wo)
        return self._geom_cache[k]

    def __call__(self, layers, startp, endp):
        layers = list(layers)                      # NCHW arrays
        for i in range(startp + 1, endp):
            j = i - startp
            proj = self.params['proj_%d' % j]
            node = self.params['node_%d' % j]
            f = self.up_f[j]
            x, prev = layers[i], layers[i - 1]
            _, _, Hi, Wi = x.shape
            upm, nmask, shifts, Ho, Wo = self._geometry(f, Hi, Wi)
            layers[i] = _ida_step(
                x, prev, proj['wmat'], proj['bvec'], upm,
                node['wmat'], node['bvec'], nmask,
                o=self.o, Ho=Ho, Wo=Wo, shifts=shifts)
        return layers


# ----------------------------- pure-XLA reference -----------------------------

def _bilinear_up_weights(f, C):
    K = 2 * f
    fc = int(math.ceil(K / 2))
    c = (2 * fc - 1 - fc % 2) / (2.0 * fc)
    w = np.zeros((K, K), dtype=np.float32)
    for i in range(K):
        for j in range(K):
            w[i, j] = (1 - abs(i / fc - c)) * (1 - abs(j / fc - c))
    w_flip = w[::-1, ::-1].copy()
    return jnp.asarray(np.tile(w_flip[:, :, None, None], (1, 1, 1, C)))


def _ref_conv3x3_bn_relu(x, w, scale, bias):
    y = jax.lax.conv_general_dilated(
        x, w, (1, 1), 'SAME',
        dimension_numbers=('NHWC', 'HWIO', 'NHWC'),
        precision=jax.lax.Precision.HIGHEST)
    return jnp.maximum(y * scale + bias, 0.0)


def _ref_depthwise_conv_transpose(x, w_flip, f):
    C = x.shape[-1]
    K = 2 * f
    p = f // 2
    pad = K - 1 - p
    return jax.lax.conv_general_dilated(
        x, w_flip, (1, 1), [(pad, pad), (pad, pad)],
        lhs_dilation=(f, f),
        dimension_numbers=('NHWC', 'HWIO', 'NHWC'),
        feature_group_count=C,
        precision=jax.lax.Precision.HIGHEST)


if __name__ == "__main__":
    key = jax.random.PRNGKey(0)

    o = 8
    channels = [8, 16, 32]
    up_f = [1, 2, 4]
    N = 2
    spatial = [32, 16, 8]
    startp, endp = 0, len(channels)

    key, k_params = jax.random.split(key)
    ida = IDAUpPallas(o, channels, up_f, k_params)

    layers_nchw = []
    for c, s in zip(channels, spatial):
        key, k = jax.random.split(key)
        layers_nchw.append(jax.random.normal(k, (N, c, s, s), jnp.float32))

    out_layers = ida(layers_nchw, startp, endp)
    out_layers = [jax.block_until_ready(x) for x in out_layers]

    # cross-check the fused Pallas pipeline against a pure-XLA reference
    ref_layers = [jnp.transpose(x, (0, 2, 3, 1)) for x in layers_nchw]   # NHWC
    for i in range(startp + 1, endp):
        j = i - startp
        proj = ida.params['proj_%d' % j]
        node = ida.params['node_%d' % j]
        f = ida.up_f[j]
        uw = _bilinear_up_weights(f, o)
        t = _ref_conv3x3_bn_relu(ref_layers[i], proj['w'], proj['scale'], proj['bias'])
        t = _ref_depthwise_conv_transpose(t, uw, f)
        ref_layers[i] = _ref_conv3x3_bn_relu(
            t + ref_layers[i - 1], node['w'], node['scale'], node['bias'])

    for a, b in zip(out_layers, ref_layers):
        a_nhwc = jnp.transpose(a, (0, 2, 3, 1))
        np.testing.assert_allclose(np.asarray(a_nhwc), np.asarray(b),
                                   rtol=2e-3, atol=2e-3)

    print("KERNEL_OK")
</pallas_src>

<mosaic_0001>
module attributes {stable_mosaic.version = 11 : i64} {
  func.func @k(%arg0: memref<8x128xf32, #tpu.memory_space<vmem>>, %arg1: memref<8x128xf32, #tpu.memory_space<vmem>>) attributes {dimension_semantics = [], scalar_prefetch = 0 : i64, scratch_operands = 0 : i64, tpu.core_type = #tpu.core_type<tc>} {
    %c0 = arith.constant 0 : index
    %c0_0 = arith.constant 0 : index
    %0 = vector.load %arg0[%c0, %c0_0] : memref<8x128xf32, #tpu.memory_space<vmem>>, vector<8x128xf32>
    %c1_i32 = arith.constant 1 : i32
    %1 = tpu.dynamic_rotate %0 by %c1_i32 dim 1 : vector<8x128xf32>, i32 -> vector<8x128xf32>
    %c0_1 = arith.constant 0 : index
    %c0_2 = arith.constant 0 : index
    %2 = vector.load %arg1[%c0_1, %c0_2] : memref<8x128xf32, #tpu.memory_space<vmem>>, vector<8x128xf32>
    tpu.vector_store %arg1[%c0_1, %c0_2], %1 {strides = array<i32>} : memref<8x128xf32, #tpu.memory_space<vmem>>, vector<8x128xf32>,
    return
  }
}

</mosaic_0001>

<bundles_post_ra>
// kernel: tpu_custom_call.1
= control target key start
LH: loop header
LB: loop body
LE: loop exit
PB: predicated region body
PF: predicated region fallthrough
CT: control target
= control target key end

     0   :  { %6 = vsyncpa [#allocation3], 0  ;;  %s128_s0 = inlined_call_operand.hbm [shape: f32[8,128], index: 0, kind: input, shape index: {}]   ;;  %s129_s1 = inlined_call_operand.hbm [shape: f32[8,128], index: 1, kind: output, shape index: {}]  }
   0x1   :  { %7 = vsyncpa [#allocation4], 0  ;;  %s91_s6 = smov [#allocation2]   ;;  %s43_s10 = scalar_lea.hbm %s128_s0, 128 }
   0x2   :  { %s14_s7 = sshll.u32 %s91_s6, 4  ;;  %p44_p0 = scmp.ne.s32.totalorder %s128_s0, %s43_s10  ;;  %s15_s7 = int_to_ptr.vmem [resolvable:$true] %s14_s7 }
   0x3   :  { %p47_p1 = scmp.lt.u32.totalorder %s43_s10, %s128_s0 }
   0x5   :  { %p49_p2 = pnand %p47_p1, %p44_p0 }
   0x7   :  { %52 = shalt.err (!%p49_p2)
}
   0x8   :  { %s53_s15 = scalar_lea.vmem %s15_s7, 128  ;;  %p58_p4 = scmp.lt.s32.totalorder %s15_s7, %s15_s7 }
   0x9   :  { %p54_p3 = scmp.ne.s32.totalorder %s15_s7, %s53_s15  ;;  %p59_p5 = scmp.lt.s32.totalorder %s53_s15, %s53_s15 }
   0xb   :  { %p60_p6 = por %p59_p5, %p58_p4 }
   0xd   :  { %p61_p7 = pnand %p60_p6, %p54_p3 }
   0xf   :  { %64 = shalt.err (!%p61_p7)
}
  0x10   :  { %17 = dma.hbm_to_vmem [thread:$0]  %s128_s0, 128, %s15_s7, [#allocation3]  }
  0x11   :  { %87 = dma.done.wait [#allocation3], 128  }
  0x12   :  { %88 = vsyncadd [#allocation3], 4294967168  ;;  %v21_v0 = vld [vmem:[#allocation2] sm:$0xff]  ;;  %s92_s18 = smov 1   ;;  %s93_s19 = smov [#allocation5]  }
  0x13   :  { %22 = vrot.lane.b32.xlu0 %v21_v0, %s92_s18  ;;  %s31_s20 = sshll.u32 %s93_s19, 4  ;;  %s32_s20 = int_to_ptr.vmem [resolvable:$true] %s31_s20 }
  0x14   :  { %s65_s21 = scalar_lea.vmem %s32_s20, 128  ;;  %p70_p9 = scmp.lt.s32.totalorder %s32_s20, %s32_s20 }
  0x15   :  { %p66_p8 = scmp.ne.s32.totalorder %s32_s20, %s65_s21  ;;  %p71_p10 = scmp.lt.s32.totalorder %s65_s21, %s65_s21 }
  0x17   :  { %p72_p11 = por %p71_p10, %p70_p9 }
  0x19   :  { %p73_p12 = pnand %p72_p11, %p66_p8 }
  0x85   :  { %v23_v1 = vpop.permute.xlu0 %22 }
  0x86   :  { %24 = vst [vmem:[#allocation5] sm:$0xff] %v23_v1 }
  0x87   :  { %76 = shalt.err (!%p73_p12)
}
  0x88   :  { %s77_s0 = scalar_lea.hbm %s129_s1, 128 }
  0x89   :  { %p78_p13 = scmp.ne.s32.totalorder %s129_s1, %s77_s0  ;;  %p81_p0 = scmp.lt.u32.totalorder %s77_s0, %s129_s1 }
  0x8b   :  { %p83_p1 = pnand %p81_p0, %p78_p13 }
  0x8d   :  { %86 = shalt.err (!%p83_p1)
}
  0x8e   :  { %34 = dma.vmem_to_hbm [thread:$0]  %s32_s20, 128, %s129_s1, [#allocation4]  }
  0x8f   :  { %89 = dma.done.wait [#allocation4], 128  }
  0x90   :  { %90 = vsyncadd [#allocation4], 4294967168 }
  0x91   :  { %38 = vsyncpa [#allocation3], 1 }
  0x92   :  { %39 = vsyncpa [#allocation4], 1 }

</bundles_post_ra>
